<compile_context>
chip_gen: v5e
topology: v5e:2x2
jax: 0.10.0
libtpu: 0.0.40
codegen_flags: <defaults>
</compile_context>

<pallas_src>
import functools

import jax
import jax.numpy as jnp
from jax.experimental import pallas as pl
from jax.experimental.pallas import tpu as pltpu

EPS = 1e-6
_MAX_TILE_BYTES = 6 * 1024 * 1024      # per input tile (in+out double-buffered = 4x)
_VMEM_LIMIT_BYTES = 48 * 1024 * 1024   # safe on v5e/v6e (128 MiB) and v7x (64 MiB)


def _layernorm_kernel(x_ref, o_ref, *, alpha, bias, eps):
    # x_ref / o_ref: VMEM tile of shape (tile_rows, D); D is never blocked.
    x = x_ref[...]
    xf = x.astype(jnp.float32)
    d = xf.shape[-1]

    # Two-pass statistics: row is fully resident in VMEM, so the second pass
    # costs no extra HBM traffic and avoids single-pass cancellation.
    mean = jnp.sum(xf, axis=-1, keepdims=True) * jnp.float32(1.0 / d)
    diff = xf - mean
    var = jnp.sum(diff * diff, axis=-1, keepdims=True) * jnp.float32(
        1.0 / max(d - 1, 1))  # unbiased, as in torch.Tensor.std
    std = jnp.sqrt(var)

    # Per-row reciprocal on the EUP; fold alpha into the scale so the
    # per-element epilogue is a single mul + add (diff reused from pass 2).
    scale = pl.reciprocal(std + jnp.float32(eps), approx=False) * jnp.float32(alpha)
    o_ref[...] = (diff * scale + jnp.float32(bias)).astype(o_ref.dtype)


def _round_up(n, m):
    return ((n + m - 1) // m) * m


def _row_alignment(itemsize):
    # A vreg holds 8 sublane-rows of 32-bit data; sub-32-bit dtypes pack 2x/4x
    # rows per sublane, so keep row tiles 16/32-aligned for bf16/int8.
    return max(8, 32 // max(1, itemsize))


def _choose_tile_rows(rows, d, itemsize, *, max_tile_bytes=_MAX_TILE_BYTES):
    """Row tile: sublane-aligned, byte-capped, no divide-evenly requirement."""
    align = _row_alignment(itemsize)
    if rows <= align:
        return rows  # single full-extent block (always a legal block shape)

    row_bytes = max(1, d * itemsize)
    cap = max(align, (max_tile_bytes // row_bytes) // align * align)
    tr = min(cap, _round_up(rows, align))

    steps = pl.cdiv(rows, tr)
    # Prefer >= 2 grid steps so the "parallel" axis can shard across v7x's 2 TCs.
    if steps == 1:
        tr = _round_up(pl.cdiv(rows, 2), align)
        steps = pl.cdiv(rows, tr)
    # Prefer an even step count (balanced across the two TensorCores) when it
    # is cheap to obtain; harmless on single-TC v5e/v6e.
    if steps > 1 and steps % 2 == 1:
        tr2 = _round_up(pl.cdiv(rows, steps + 1), align)
        if tr2 >= align and pl.cdiv(rows, tr2) % 2 == 0:
            tr = tr2
    return tr


def pallas_layer_norm(x, alpha, bias, eps=EPS):
    """x: [..., D]. Returns alpha*(x-mean)/(std+eps)+bias over the last dim."""
    orig_shape = x.shape
    d = orig_shape[-1]
    rows = 1
    for s in orig_shape[:-1]:
        rows *= s
    x2 = x.reshape(rows, d)

    tr = _choose_tile_rows(rows, d, x2.dtype.itemsize)
    grid = (pl.cdiv(rows, tr),)  # partial last block is masked by Pallas

    kernel = functools.partial(
        _layernorm_kernel,
        alpha=float(jnp.asarray(alpha).reshape(())),
        bias=float(jnp.asarray(bias).reshape(())),
        eps=float(eps),
    )

    out = pl.pallas_call(
        kernel,
        out_shape=jax.ShapeDtypeStruct((rows, d), x.dtype),
        grid=grid,
        in_specs=[pl.BlockSpec((tr, d), lambda i: (i, 0))],   # full D per tile
        out_specs=pl.BlockSpec((tr, d), lambda i: (i, 0)),
        compiler_params=pltpu.CompilerParams(
            dimension_semantics=("parallel",),
            vmem_limit_bytes=_VMEM_LIMIT_BYTES,
        ),
    )(x2)

    return out.reshape(orig_shape)


class LayerNormalization:
    """JAX/Pallas port of the PyTorch LayerNormalization module."""

    def __init__(self, eps=EPS):
        self.eps = eps
        self.alpha = jnp.ones((1,), dtype=jnp.float32)   # nn.Parameter(torch.ones(1))
        self.bias = jnp.zeros((1,), dtype=jnp.float32)   # nn.Parameter(torch.zeros(1))

    def __call__(self, x):
        return pallas_layer_norm(x, self.alpha, self.bias, self.eps)


def _reference_layer_norm(x, alpha, bias, eps=EPS):
    mean = jnp.mean(x, axis=-1, keepdims=True)
    var = jnp.sum((x - mean) ** 2, axis=-1, keepdims=True) / (x.shape[-1] - 1)
    std = jnp.sqrt(var)
    return alpha * (x - mean) / (std + eps) + bias


if __name__ == "__main__":
    key = jax.random.PRNGKey(0)
    batch, seq, d_model = 2, 8, 32
    x = jax.random.normal(key, (batch, seq, d_model), dtype=jnp.float32)

    ln = LayerNormalization()
    out = jax.block_until_ready(ln(x))
    ref = _reference_layer_norm(x, 1.0, 0.0)
    assert out.shape == x.shape
    assert jnp.allclose(out, ref, atol=1e-5, rtol=1e-5), "mismatch vs reference"

    # Also exercise the cdiv / masked partial-last-block path (rows % 8 != 0).
    x_odd = jax.random.normal(jax.random.PRNGKey(1), (3, 5, d_model), dtype=jnp.float32)
    out_odd = jax.block_until_ready(ln(x_odd))
    ref_odd = _reference_layer_norm(x_odd, 1.0, 0.0)
    assert jnp.allclose(out_odd, ref_odd, atol=1e-5, rtol=1e-5), "mismatch (partial block)"

    print("KERNEL_OK")
</pallas_src>

<mosaic_0001>
module attributes {stable_mosaic.version = 11 : i64} {
  func.func @_layernorm_kernel(%arg0: i32, %arg1: memref<8x32xf32, #tpu.memory_space<vmem>>, %arg2: memref<8x32xf32, #tpu.memory_space<vmem>>) attributes {dimension_semantics = [#tpu.dimension_semantics<parallel>], iteration_bounds = array<i64: 2>, scalar_prefetch = 0 : i64, scratch_operands = 0 : i64, tpu.core_type = #tpu.core_type<tc>, window_params = [{transform_indices = @transform_0, window_bounds = array<i64: 8, 32>}, {transform_indices = @transform_1, window_bounds = array<i64: 8, 32>}]} {
    %c0 = arith.constant 0 : index
    %c0_0 = arith.constant 0 : index
    %0 = vector.load %arg1[%c0, %c0_0] : memref<8x32xf32, #tpu.memory_space<vmem>>, vector<8x32xf32>
    %cst = arith.constant dense<0.000000e+00> : vector<8xf32>
    %1 = vector.multi_reduction <add>, %0, %cst [1] : vector<8x32xf32> to vector<8xf32>
    %2 = vector.shape_cast %1 : vector<8xf32> to vector<8x1xf32>
    %cst_1 = arith.constant 3.125000e-02 : f32
    %3 = vector.broadcast %cst_1 : f32 to vector<8x1xf32>
    %4 = arith.mulf %2, %3 : vector<8x1xf32>
    %5 = vector.broadcast %4 : vector<8x1xf32> to vector<8x32xf32>
    %6 = arith.subf %0, %5 : vector<8x32xf32>
    %7 = arith.mulf %6, %6 : vector<8x32xf32>
    %cst_2 = arith.constant dense<0.000000e+00> : vector<8xf32>
    %8 = vector.multi_reduction <add>, %7, %cst_2 [1] : vector<8x32xf32> to vector<8xf32>
    %9 = vector.shape_cast %8 : vector<8xf32> to vector<8x1xf32>
    %cst_3 = arith.constant 0.0322580636 : f32
    %10 = vector.broadcast %cst_3 : f32 to vector<8x1xf32>
    %11 = arith.mulf %9, %10 : vector<8x1xf32>
    %12 = math.sqrt %11 : vector<8x1xf32>
    %cst_4 = arith.constant 9.99999997E-7 : f32
    %13 = vector.broadcast %cst_4 : f32 to vector<8x1xf32>
    %14 = arith.addf %12, %13 : vector<8x1xf32>
    %15 = tpu.reciprocal %14 : vector<8x1xf32> -> vector<8x1xf32>
    %cst_5 = arith.constant 1.000000e+00 : f32
    %16 = vector.broadcast %cst_5 : f32 to vector<8x1xf32>
    %17 = arith.mulf %15, %16 : vector<8x1xf32>
    %18 = vector.broadcast %17 : vector<8x1xf32> to vector<8x32xf32>
    %19 = arith.mulf %6, %18 : vector<8x32xf32>
    %cst_6 = arith.constant 0.000000e+00 : f32
    %20 = vector.broadcast %cst_6 : f32 to vector<8x32xf32>
    %21 = arith.addf %19, %20 : vector<8x32xf32>
    %c0_7 = arith.constant 0 : index
    %c0_8 = arith.constant 0 : index
    %22 = vector.load %arg2[%c0_7, %c0_8] : memref<8x32xf32, #tpu.memory_space<vmem>>, vector<8x32xf32>
    tpu.vector_store %arg2[%c0_7, %c0_8], %21 {strides = array<i32>} : memref<8x32xf32, #tpu.memory_space<vmem>>, vector<8x32xf32>,
    return
  }
  func.func @transform_0(%arg0: i32) -> (i32, i32) {
    %c0_i32 = arith.constant 0 : i32
    %c0_i32_0 = arith.constant 0 : i32
    return %arg0, %c0_i32 : i32, i32
  }
  func.func @transform_1(%arg0: i32) -> (i32, i32) {
    %c0_i32 = arith.constant 0 : i32
    %c0_i32_0 = arith.constant 0 : i32
    return %arg0, %c0_i32 : i32, i32
  }
}

</mosaic_0001>

<bundles_post_ra>
// kernel: tpu_custom_call.1
= control target key start
LH: loop header
LB: loop body
LE: loop exit
PB: predicated region body
PF: predicated region fallthrough
CT: control target
= control target key end

     0   :  { %6 = vsyncpa [#allocation3], 0  ;;  %s566_s0 = inlined_call_operand.hbm [shape: f32[16,32], index: 0, kind: input, shape index: {}]   ;;  %s567_s1 = inlined_call_operand.hbm [shape: f32[16,32], index: 1, kind: output, shape index: {}]  }
   0x1   :  { %8 = vsyncpa [#allocation3 + $0x1], 0 }
   0x2   :  { %9 = vsyncpa [#allocation4], 0 }
   0x3   :  { %11 = vsyncpa [#allocation4 + $0x1], 0  ;;  %s432_s6 = smov 0   ;;  %s434_s7 = smov 0  }
   0x4   :  { %s436_s8 = smov 0   ;;  %s438_s9 = smov 0  }
   0x5 LB: > { %s453_s10 = sadd.s32 4294967295, %s420_s9   ;;  %s262_s11 = sadd.s32 4294967294, %s420_s9   ;;  %s420_s9 = sphi %s438_s9, %s577_s9   ;;  %s416_s8 = sphi %s436_s8, %s576_s8   ;;  %s412_s7 = sphi %s434_s7, %s575_s7   ;;  %s408_s6 = sphi %s432_s6, %s574_s6  }
   0x6   : > { %s457_s12 = sadd.s32 1, %s420_s9   ;;  %s24_s13 = sadd.s32 1, %s416_s8 }
   0x7   : > { %s21_s14 = ssub.s32 %s420_s9, %s457_s12  ;;  %p31_p0 = scmp.ne.s32.totalorder %s416_s8, %s412_s7 }
   0x8   : > { %p22_p1 = scmp.eq.s32.totalorder %s21_s14, 0  ;;  %p32_p2 = scmp.eq.s32.totalorder %s420_s9, 0 }
   0x9   : > { %p37_p3 = scmp.ne.s32.totalorder %s412_s7, %s408_s6  ;;  %p38_p4 = scmp.eq.s32.totalorder %s453_s10, 0 }
   0xa   : > { %s469_s15 = scalar_select %p22_p1, %s416_s8, %s24_s13  }
   0xb   : > { %p471_p5 = por %p32_p2, %p31_p0  ;;  %p475_p6 = por %p38_p4, %p37_p3 }
   0xc   : > { %p61_p7 = scmp.eq.s32.totalorder %s453_s10, 1  ;;  %p67_p8 = scmp.eq.s32.totalorder %s262_s11, 1 }
   0xd   : > { %p286_p10 = scmp.lt.s32.totalorder %s420_s9, 2  ;;  %s87_s20 = sand.u32 1, %s416_s8  }
   0xe   : > { %p482_p11 = por %p61_p7, %p31_p0  ;;  %p486_p12 = por %p67_p8, %p37_p3 }
   0xf   : > { %s266_s21 = sshll.u32 %s420_s9, 3  ;;  %s265_s22 = sshll.u32 %s87_s20, 3 }
  0x10   : > { %s95_s25 = scalar_lea.hbm %s566_s0, %s266_s21  ;;  %s91_s27 = scalar_lea.vmem [#allocation2], %s265_s22 }
  0x11   : > { %s97_s26 = sshll.u32 %s95_s25, 4  ;;  %s99_s28 = sshll.u32 %s91_s27, 4  ;;  %s98_s26 = int_to_ptr.hbm [resolvable:$true] %s97_s26  ;;  %s100_s28 = int_to_ptr.vmem [resolvable:$true] %s99_s28 }
  0x12   : > { %p497_p13 = pnand %p286_p10, %p471_p5  ;;  %p267_p0 = scmp.ge.s32.totalorder %s420_s9, 1 }
  0x13   : > { %p104_p1 = scmp.lt.s32.totalorder %s420_s9, 3  ;;  %s88_s30 = scalar_lea.sflag [#allocation3], %s87_s20 }
  0x14   : > { %s324_s2 = sshra.s32 %s98_s26, 4  ;;  %p328_p3 = pneg %p497_p13  ;;  %s325_s2 = int_to_ptr.hbm [resolvable:$true] %s324_s2 }
  0x15   : > { %s326_s3 = scalar_lea.hbm %s325_s2, 8  ;;  %s331_s11 = scalar_lea.hbm %s566_s0, 16 }
  0x16   : > { %p327_p2 = scmp.ne.s32.totalorder %s325_s2, %s326_s3  ;;  %p332_p5 = scmp.lt.s32.totalorder %s325_s2, %s566_s0 }
  0x17   : > { %p333_p8 = scmp.lt.s32.totalorder %s331_s11, %s326_s3 }
  0x18   : > { %p329_p4 = pnand %p328_p3, %p327_p2 }
  0x19   : > { %p334_p10 = por %p333_p8, %p332_p5 }
  0x1a   : > { %p330_p7 = pneg %p329_p4 }
  0x1c   : > { %p335_p9 = pnand %p334_p10, %p330_p7 }
  0x1e   : > { %338 = shalt.err (!%p335_p9)
}
  0x1f   : > { %281 = dma.hbm_to_vmem [thread:$0]  (!%p497_p13), %s98_s26, 128, %s100_s28, %s88_s30  }
  0x20   : > { %p105_p2 = pnand %p267_p0, %p104_p1 }
  0x21   : > { %s518_s16 = sand.u32 (!%p105_p2), 1, %s412_s7  }
  0x22   : > { %108 = sbr.rel (%p105_p2) target bundleno = 328 (0x148), region = 24  ;;  %s268_s20 = sshll.u32 (!%p105_p2), %s518_s16, 3 }
  0x23   : > { %s111_s21 = scalar_lea.sflag (!%p105_p2), [#allocation3], %s518_s16  ;;  %s114_s22 = scalar_lea.vmem (!%p105_p2), [#allocation2], %s268_s20 }
  0x27   : > { %399 = dma.done.wait (%p475_p6), %s111_s21, 128  }
  0x28   : > { %401 = vsyncadd (%p475_p6), %s111_s21, 4294967168  ;;  %vm135_vm0 = vcmask 261120   ;;  %v134_v0 = vld [vmem:[%s114_s22] sm:$0xff]  ;;  %s271_s17 = sshll.u32 %s453_s10, 3  ;;  %s133_s26 = scalar_lea.vmem [#allocation5], %s268_s20 }
  0x29   : > { %v136_v1 = vsel %vm135_vm0, %v134_v0, 0.0  ;;  %s187_s25 = scalar_lea.hbm %s567_s1, %s271_s17  ;;  %s189_s27 = sshll.u32 %s133_s26, 4  ;;  %s190_s27 = int_to_ptr.vmem [resolvable:$true] %s189_s27 }
  0x2a   : > { %137 = vadd.xlane.f32.xlu0 %v136_v1  ;;  %s191_s28 = sshll.u32 %s187_s25, 4  ;;  %s177_s10 = scalar_lea.sflag [#allocation4], %s518_s16  ;;  %s192_s28 = int_to_ptr.hbm [resolvable:$true] %s191_s28 }
  0x2b   : > { %s368_s29 = sshra.s32 %s192_s28, 4  ;;  %s374_s4 = scalar_lea.hbm %s567_s1, 16  ;;  %s369_s29 = int_to_ptr.hbm [resolvable:$true] %s368_s29 }
  0x2c   : > { %s370_s30 = scalar_lea.hbm %s369_s29, 8  ;;  %p375_p0 = scmp.lt.s32.totalorder %s369_s29, %s567_s1 }
  0x2d   : > { %p371_p6 = scmp.ne.s32.totalorder %s369_s29, %s370_s30  ;;  %p376_p1 = scmp.lt.s32.totalorder %s374_s4, %s370_s30 }
  0x2f   : > { %p372_p9 = pnand %p371_p6, %p482_p11  ;;  %p377_p3 = por %p376_p1, %p375_p0 }
  0x31   : > { %p373_p13 = pneg %p372_p9 }
  0x33   : > { %p378_p4 = pnand %p377_p3, %p373_p13 }
  0x9d   : > { %v138_v2 = vpop.xlane.xlu0 %137 }
  0x9e   : > { %v139_v3 = vmul.f32 0.03125, %v138_v2 }
  0xa0   : > { %v140_v4 = vsub.f32 %v134_v0, %v139_v3 }
  0xa2   : > { %v141_v5 = vmul.f32 %v140_v4, %v140_v4 }
  0xa4   : > { %v142_v6 = vsel %vm135_vm0, %v141_v5, 0.0 }
  0xa5   : > { %143 = vadd.xlane.f32.xlu0 %v142_v6 }
 0x118   : > { %v144_v7 = vpop.xlane.xlu0 %143 }
 0x119   : > { %v145_v8 = vmul.f32 0.032258064, %v144_v7 }
 0x11b   : > { %320 = vrsqrt.f32 %v145_v8  ;;  %vm153_vm1 = vcmp.eq.f32.partialorder %v145_v8, inf  ;;  %v156_v16 = vand.u32 2147483648, %v145_v8  ;;  %vm155_vm2 = vcmp.eq.f32.partialorder %v145_v8, 0.0 }
 0x121   : > { %v321_v9 = vpop.eup %320 }
 0x122   : > { %v147_v10 = vmul.f32 %v321_v9, %v145_v8 }
 0x124   : > { %v148_v11 = vmul.f32 %v321_v9, %v147_v10 }
 0x126   : > { %v149_v12 = vmul.f32 0.5, %v148_v11 }
 0x128   : > { %v150_v13 = vsub.f32 1.5, %v149_v12 }
 0x12a   : > { %v151_v14 = vmul.f32 %v321_v9, %v150_v13 }
 0x12c   : > { %v152_v15 = vmul.f32 %v151_v14, %v145_v8 }
 0x12e   : > { %v154_v17 = vsel %vm153_vm1, %v145_v8, %v152_v15 }
 0x12f   : > { %v157_v18 = vsel %vm155_vm2, %v156_v16, %v154_v17 }
 0x130   : > { %v158_v19 = vadd.f32 1e-06, %v157_v18 }
 0x132   : > { %322 = vrcp.f32 %v158_v19  ;;  %v170_v23 = vand.u32 2147483648, %v158_v19  ;;  %v168_v25 = vand.u32 2147483647, %v158_v19  ;;  %vm164_vm4 = vweird.f32 %v158_v19 }
 0x134   : > { %v171_v27 = vor.u32 1.1754944e-38, %v170_v23  ;;  %vm169_vm6 = vcmp.eq.f32.partialorder %v168_v25, 8.507059e+37 }
 0x138   : > { %v323_v20 = vpop.eup %322 }
 0x139   : > { %v160_v21 = vmul.f32 %v323_v20, %v158_v19  ;;  %vm165_vm3 = vweird.f32 %v323_v20 }
 0x13a   : > { %vm166_vm5 = vmor %vm164_vm4, %vm165_vm3 }
 0x13b   : > { %v161_v22 = vsub.f32 1.0, %v160_v21 }
 0x13d   : > { %v162_v24 = vmul.f32 %v323_v20, %v161_v22 }
 0x13f   : > { %v163_v26 = vadd.f32 %v323_v20, %v162_v24 }
 0x141   : > { %v167_v28 = vsel %vm166_vm5, %v323_v20, %v163_v26 }
 0x142   : > { %v172_v29 = vsel %vm169_vm6, %v171_v27, %v167_v28 }
 0x143   : > { %v173_v30 = vmul.f32 %v172_v29, %v140_v4 }
 0x145   : > { %175 = vst.msk [vmem:[%s133_s26] sm:$0xff] %vm135_vm0, %v173_v30 }
 0x146   : > { %381 = shalt.err (!%p378_p4)
}
 0x147   : > { %276 = dma.vmem_to_hbm [thread:$0]  (%p482_p11), %s190_s27, 128, %s192_s28, %s177_s10  }
 0x148 PF: > { %s203_s13 = sand.u32 1, %s408_s6   ;;  %p573_p7 = scmp.ge.s32.totalorder %s420_s9, 2 }
 0x149   : > { %s204_s14 = scalar_lea.sflag [#allocation4], %s203_s13 }
 0x14a   : > { %p283_p5 = pnand %p573_p7, %p486_p12 }
 0x14c   : > { %p284_p8 = pneg %p283_p5 }
 0x14e   : > { %403 = dma.done.wait (%p284_p8), %s204_s14, 128  }
 0x14f   : > { %405 = vsyncadd (%p284_p8), %s204_s14, 4294967168  ;;  %p14_p10 = scmp.ge.s32.totalorder %s457_s12, 4   ;;  %s574_s6 = smov %s412_s7 }
 0x150   : > { %s575_s7 = smov %s416_s8  ;;  %s576_s8 = smov %s469_s15 }
 0x151   : > { %s577_s9 = smov %s457_s12  ;;  %16 = sbr.rel (!%p14_p10) target bundleno = 5 (0x5), region = 69 }
 0x156   :  { %210 = vsyncpa [#allocation3], 1 }
 0x157   :  { %212 = vsyncpa [#allocation3 + $0x1], 1 }
 0x158   :  { %213 = vsyncpa [#allocation4], 1 }
 0x159   :  { %215 = vsyncpa [#allocation4 + $0x1], 1 }

</bundles_post_ra>
